<compile_context>
chip_gen: v6e
topology: v6e:2x2x1
jax: 0.10.0
libtpu: 0.0.40
codegen_flags: <defaults>
</compile_context>

<pallas_src>
import functools
import math

import jax
import jax.numpy as jnp
from jax.experimental import pallas as pl
from jax.experimental.pallas import tpu as pltpu

# ----- model hyper-parameters (small, consistent with the module) -----------
B = 2           # batch
T = 8           # sequence length (== max_length)
E = 32          # emb_dim
NUM_HEADS = 4
HEAD_DIM = E // NUM_HEADS
LN_EPS = 1e-5


def _layernorm(v, g, b, eps=LN_EPS):
    mu = jnp.mean(v, axis=-1, keepdims=True)
    var = jnp.mean((v - mu) ** 2, axis=-1, keepdims=True)
    return (v - mu) * jax.lax.rsqrt(var + eps) * g + b


def _gelu_tanh(x):
    # tanh-approx GELU: runs on the (otherwise idle) EUP slot instead of a VPU
    # erf polynomial; within ~1e-3 of exact GELU at these activation scales.
    c = math.sqrt(2.0 / math.pi)
    return 0.5 * x * (1.0 + jnp.tanh(c * (x + 0.044715 * (x * x * x))))


def decoder_block_kernel(
    batch, seq_len, num_heads,          # static (via functools.partial)
    x_ref,                              # (N, E), N = batch * seq_len
    g1_ref, b1_ref,                     # (1, E), (1, E)
    wqkv_ref, bqkv_ref,                 # (E, 3E) bf16 (Q-scaled), (1, 3E) f32
    wo_ref, bo_ref,                     # (E, E) bf16, (1, E) f32
    g2_ref, b2_ref,                     # (1, E), (1, E)
    wfc_ref, bfc_ref,                   # (E, 4E) bf16, (1, 4E) f32
    wp_ref, bp_ref,                     # (4E, E) bf16, (1, E) f32
    o_ref,                              # (N, E)
):
    x = x_ref[...].astype(jnp.float32)          # (N, E)
    n, e = x.shape
    head_dim = e // num_heads

    # ---- ln_1 + causal self-attention ----
    h = _layernorm(x, g1_ref[...], b1_ref[...])

    # Single fused QKV projection: one MXU dot. 1/sqrt(Dh) is already folded
    # into the Q columns of wqkv/bqkv (done once in prepare_params).
    qkv = jnp.dot(h.astype(jnp.bfloat16), wqkv_ref[...],
                  preferred_element_type=jnp.float32) + bqkv_ref[...]   # (N, 3E)

    # Head split: static lane slices stacked along a new LEADING batch axis
    # (no transposes / relayouts of the activations).
    groups = [qkv[:, g * head_dim:(g + 1) * head_dim]
              for g in range(3 * num_heads)]
    q = jnp.stack(groups[:num_heads]).astype(jnp.bfloat16)              # (H,N,Dh)
    k = jnp.stack(groups[num_heads:2 * num_heads]).astype(jnp.bfloat16) # (H,N,Dh)
    v = jnp.stack(groups[2 * num_heads:]).astype(jnp.bfloat16)          # (H,N,Dh)

    # Per-head scores, f32 accumulation (scale already folded into Q).
    s = jnp.einsum("hqd,hkd->hqk", q, k,
                   preferred_element_type=jnp.float32)                  # (H,N,N)

    # Block-diagonal causal mask over the flattened (batch*seq) axis,
    # built from comparisons only (statically unrolled over batch boundaries).
    row = jax.lax.broadcasted_iota(jnp.int32, (n, n), 0)
    col = jax.lax.broadcasted_iota(jnp.int32, (n, n), 1)
    mask = col <= row
    for bi in range(1, batch):
        boundary = bi * seq_len
        mask = mask & ~((col < boundary) & (row >= boundary))
    s = jnp.where(mask[None], s, jnp.float32(-1e30))

    # Softmax entirely in f32.
    s = s - jnp.max(s, axis=-1, keepdims=True)
    p = jnp.exp(s)
    p = p * pl.reciprocal(jnp.sum(p, axis=-1, keepdims=True), approx=True)

    o_h = jnp.einsum("hqk,hkd->hqd", p.astype(jnp.bfloat16), v,
                     preferred_element_type=jnp.float32)                # (H,N,Dh)

    # Merge heads back to (N, E) with a lane concat, then ONE output
    # projection dot against the original wo.
    attn_cat = jnp.concatenate([o_h[hh] for hh in range(num_heads)], axis=-1)
    attn = jnp.dot(attn_cat.astype(jnp.bfloat16), wo_ref[...],
                   preferred_element_type=jnp.float32) + bo_ref[...]
    # attn / resid dropout are identity in eval mode.
    x = x + attn

    # ---- ln_2 + FFN(GELU) ----
    h2 = _layernorm(x, g2_ref[...], b2_ref[...])
    f = jnp.dot(h2.astype(jnp.bfloat16), wfc_ref[...],
                preferred_element_type=jnp.float32) + bfc_ref[...]
    f = _gelu_tanh(f)
    f = jnp.dot(f.astype(jnp.bfloat16), wp_ref[...],
                preferred_element_type=jnp.float32) + bp_ref[...]
    # FFN dropout is identity in eval mode.
    x = x + f

    o_ref[...] = x.astype(o_ref.dtype)


def prepare_params(params):
    """One-time parameter preparation (call ONCE, outside the forward path).

    Folds the 1/sqrt(Dh) attention scale into the Q slice of wqkv/bqkv and
    pre-casts the matmul weights to bf16 (MXU operands); biases / LayerNorm
    params stay f32 (added / applied in f32 inside the kernel).
    """
    e = params["wqkv"].shape[0]
    head_dim = e // NUM_HEADS
    scale = 1.0 / math.sqrt(head_dim)

    wqkv = params["wqkv"].at[:, :e].multiply(scale)
    bqkv = params["bqkv"].at[:, :e].multiply(scale)

    return {
        "g1": params["g1"], "b1": params["b1"],
        "g2": params["g2"], "b2": params["b2"],
        "wqkv": wqkv.astype(jnp.bfloat16),
        "bqkv": bqkv,
        "wo": params["wo"].astype(jnp.bfloat16),
        "bo": params["bo"],
        "wfc": params["wfc"].astype(jnp.bfloat16),
        "bfc": params["bfc"],
        "wp": params["wp"].astype(jnp.bfloat16),
        "bp": params["bp"],
    }


def decoder_block(x, prep):
    """Forward pass. `prep` must come from prepare_params()."""
    Bx, Tx, Ex = x.shape
    N = Bx * Tx

    # Flatten (B, T, E) -> (B*T, E); attention batching handled by the
    # block-diagonal causal mask inside the kernel.
    x2d = x.reshape(N, Ex)

    args = (
        x2d,
        prep["g1"], prep["b1"],
        prep["wqkv"], prep["bqkv"],
        prep["wo"], prep["bo"],
        prep["g2"], prep["b2"],
        prep["wfc"], prep["bfc"],
        prep["wp"], prep["bp"],
    )

    kernel = functools.partial(decoder_block_kernel, Bx, Tx, NUM_HEADS)

    out2d = pl.pallas_call(
        kernel,
        out_shape=jax.ShapeDtypeStruct((N, Ex), x.dtype),
        in_specs=[pl.BlockSpec(memory_space=pltpu.MemorySpace.VMEM)
                  for _ in args],
        out_specs=pl.BlockSpec(memory_space=pltpu.MemorySpace.VMEM),
    )(*args)
    return out2d.reshape(Bx, Tx, Ex)


# ----------------------------- reference (pure JAX) --------------------------
def decoder_block_ref(x, p):
    def ln(v, g, b):
        mu = jnp.mean(v, axis=-1, keepdims=True)
        var = jnp.mean((v - mu) ** 2, axis=-1, keepdims=True)
        return (v - mu) / jnp.sqrt(var + LN_EPS) * g + b

    h = ln(x, p["g1"][0], p["b1"][0])
    qkv = h @ p["wqkv"] + p["bqkv"][0]
    q, k, v = jnp.split(qkv, 3, axis=-1)

    def split_heads(a):  # (B,T,E) -> (B,H,T,Dh)
        return a.reshape(B, T, NUM_HEADS, HEAD_DIM).transpose(0, 2, 1, 3)

    q, k, v = split_heads(q), split_heads(k), split_heads(v)
    s = jnp.einsum("bhqd,bhkd->bhqk", q, k) / math.sqrt(HEAD_DIM)
    causal = jnp.tril(jnp.ones((T, T), dtype=bool))
    s = jnp.where(causal, s, -1e30)
    pattn = jax.nn.softmax(s, axis=-1)
    o = jnp.einsum("bhqk,bhkd->bhqd", pattn, v)
    o = o.transpose(0, 2, 1, 3).reshape(B, T, E)
    o = o @ p["wo"] + p["bo"][0]
    x = x + o

    h2 = ln(x, p["g2"][0], p["b2"][0])
    f = h2 @ p["wfc"] + p["bfc"][0]
    f = jax.nn.gelu(f, approximate=False)
    f = f @ p["wp"] + p["bp"][0]
    return x + f


# ----------------------------------- main ------------------------------------
if __name__ == "__main__":
    key = jax.random.PRNGKey(0)
    ks = jax.random.split(key, 8)

    params = {
        # LayerNorm params (stored as (1, E) for clean 2-D VMEM layout)
        "g1": jnp.ones((1, E), jnp.float32),
        "b1": jnp.zeros((1, E), jnp.float32),
        "g2": jnp.ones((1, E), jnp.float32),
        "b2": jnp.zeros((1, E), jnp.float32),
        # attention: fused qkv projection + output projection
        "wqkv": 0.02 * jax.random.normal(ks[0], (E, 3 * E), jnp.float32),
        "bqkv": 0.02 * jax.random.normal(ks[1], (1, 3 * E), jnp.float32),
        "wo":   0.02 * jax.random.normal(ks[2], (E, E), jnp.float32),
        "bo":   0.02 * jax.random.normal(ks[3], (1, E), jnp.float32),
        # FFN
        "wfc":  0.02 * jax.random.normal(ks[4], (E, 4 * E), jnp.float32),
        "bfc":  0.02 * jax.random.normal(ks[5], (1, 4 * E), jnp.float32),
        "wp":   0.02 * jax.random.normal(ks[6], (4 * E, E), jnp.float32),
        "bp":   0.02 * jax.random.normal(ks[7], (1, E), jnp.float32),
    }

    # One-time weight preparation (scale folding + bf16 cast) — not per call.
    prep = prepare_params(params)

    x = jax.random.normal(jax.random.PRNGKey(42), (B, T, E), jnp.float32)

    out = decoder_block(x, prep)
    out = jax.block_until_ready(out)

    ref = decoder_block_ref(x, params)
    assert out.shape == (B, T, E)
    assert bool(jnp.all(jnp.isfinite(out)))
    assert bool(jnp.allclose(out, ref, atol=1e-2, rtol=1e-2))

    print("KERNEL_OK")
</pallas_src>

<mosaic_0001>
module attributes {stable_mosaic.version = 11 : i64} {
  func.func @decoder_block_kernel(%arg0: memref<16x32xf32, #tpu.memory_space<vmem>>, %arg1: memref<1x32xf32, #tpu.memory_space<vmem>>, %arg2: memref<1x32xf32, #tpu.memory_space<vmem>>, %arg3: memref<32x96xbf16, #tpu.memory_space<vmem>>, %arg4: memref<1x96xf32, #tpu.memory_space<vmem>>, %arg5: memref<32x32xbf16, #tpu.memory_space<vmem>>, %arg6: memref<1x32xf32, #tpu.memory_space<vmem>>, %arg7: memref<1x32xf32, #tpu.memory_space<vmem>>, %arg8: memref<1x32xf32, #tpu.memory_space<vmem>>, %arg9: memref<32x128xbf16, #tpu.memory_space<vmem>>, %arg10: memref<1x128xf32, #tpu.memory_space<vmem>>, %arg11: memref<128x32xbf16, #tpu.memory_space<vmem>>, %arg12: memref<1x32xf32, #tpu.memory_space<vmem>>, %arg13: memref<16x32xf32, #tpu.memory_space<vmem>>) attributes {dimension_semantics = [], scalar_prefetch = 0 : i64, scratch_operands = 0 : i64, tpu.core_type = #tpu.core_type<tc>} {
    %c0 = arith.constant 0 : index
    %c0_0 = arith.constant 0 : index
    %0 = vector.load %arg0[%c0, %c0_0] : memref<16x32xf32, #tpu.memory_space<vmem>>, vector<16x32xf32>
    %c0_1 = arith.constant 0 : index
    %c0_2 = arith.constant 0 : index
    %1 = vector.load %arg1[%c0_1, %c0_2] : memref<1x32xf32, #tpu.memory_space<vmem>>, vector<1x32xf32>
    %c0_3 = arith.constant 0 : index
    %c0_4 = arith.constant 0 : index
    %2 = vector.load %arg2[%c0_3, %c0_4] : memref<1x32xf32, #tpu.memory_space<vmem>>, vector<1x32xf32>
    %cst = arith.constant dense<0.000000e+00> : vector<16xf32>
    %3 = vector.multi_reduction <add>, %0, %cst [1] : vector<16x32xf32> to vector<16xf32>
    %4 = vector.shape_cast %3 : vector<16xf32> to vector<16x1xf32>
    %cst_5 = arith.constant 3.200000e+01 : f32
    %5 = vector.broadcast %cst_5 : f32 to vector<16x1xf32>
    %6 = arith.divf %4, %5 : vector<16x1xf32>
    %7 = vector.broadcast %6 : vector<16x1xf32> to vector<16x32xf32>
    %8 = arith.subf %0, %7 : vector<16x32xf32>
    %9 = arith.mulf %8, %8 : vector<16x32xf32>
    %cst_6 = arith.constant dense<0.000000e+00> : vector<16xf32>
    %10 = vector.multi_reduction <add>, %9, %cst_6 [1] : vector<16x32xf32> to vector<16xf32>
    %11 = vector.shape_cast %10 : vector<16xf32> to vector<16x1xf32>
    %cst_7 = arith.constant 3.200000e+01 : f32
    %12 = vector.broadcast %cst_7 : f32 to vector<16x1xf32>
    %13 = arith.divf %11, %12 : vector<16x1xf32>
    %14 = vector.broadcast %6 : vector<16x1xf32> to vector<16x32xf32>
    %15 = arith.subf %0, %14 : vector<16x32xf32>
    %cst_8 = arith.constant 9.99999974E-6 : f32
    %16 = vector.broadcast %cst_8 : f32 to vector<16x1xf32>
    %17 = arith.addf %13, %16 : vector<16x1xf32>
    %18 = math.rsqrt %17 : vector<16x1xf32>
    %19 = vector.broadcast %18 : vector<16x1xf32> to vector<16x32xf32>
    %20 = arith.mulf %15, %19 : vector<16x32xf32>
    %21 = vector.broadcast %1 : vector<1x32xf32> to vector<16x32xf32>
    %22 = arith.mulf %20, %21 : vector<16x32xf32>
    %23 = vector.broadcast %2 : vector<1x32xf32> to vector<16x32xf32>
    %24 = arith.addf %22, %23 : vector<16x32xf32>
    %25 = arith.truncf %24 : vector<16x32xf32> to vector<16x32xbf16>
    %c0_9 = arith.constant 0 : index
    %c0_10 = arith.constant 0 : index
    %26 = vector.load %arg3[%c0_9, %c0_10] : memref<32x96xbf16, #tpu.memory_space<vmem>>, vector<32x96xbf16>
    %cst_11 = arith.constant dense<0.000000e+00> : vector<16x96xf32>
    %27 = tpu.matmul %25, %26, %cst_11 {dimension_numbers = #tpu.dot_dimension_numbers<[1], [0], [0], [1], [0, 0, 1, 1], [], []>} : vector<16x32xbf16>, vector<32x96xbf16>, vector<16x96xf32> -> vector<16x96xf32>
    %c0_12 = arith.constant 0 : index
    %c0_13 = arith.constant 0 : index
    %28 = vector.load %arg4[%c0_12, %c0_13] : memref<1x96xf32, #tpu.memory_space<vmem>>, vector<1x96xf32>
    %29 = vector.broadcast %28 : vector<1x96xf32> to vector<16x96xf32>
    %30 = arith.addf %27, %29 : vector<16x96xf32>
    %31 = vector.extract_strided_slice %30 {offsets = [0, 0], sizes = [16, 8], strides = [1, 1]} : vector<16x96xf32> to vector<16x8xf32>
    %32 = vector.extract_strided_slice %30 {offsets = [0, 8], sizes = [16, 8], strides = [1, 1]} : vector<16x96xf32> to vector<16x8xf32>
    %33 = vector.extract_strided_slice %30 {offsets = [0, 16], sizes = [16, 8], strides = [1, 1]} : vector<16x96xf32> to vector<16x8xf32>
    %34 = vector.extract_strided_slice %30 {offsets = [0, 24], sizes = [16, 8], strides = [1, 1]} : vector<16x96xf32> to vector<16x8xf32>
    %35 = vector.extract_strided_slice %30 {offsets = [0, 32], sizes = [16, 8], strides = [1, 1]} : vector<16x96xf32> to vector<16x8xf32>
    %36 = vector.extract_strided_slice %30 {offsets = [0, 40], sizes = [16, 8], strides = [1, 1]} : vector<16x96xf32> to vector<16x8xf32>
    %37 = vector.extract_strided_slice %30 {offsets = [0, 48], sizes = [16, 8], strides = [1, 1]} : vector<16x96xf32> to vector<16x8xf32>
    %38 = vector.extract_strided_slice %30 {offsets = [0, 56], sizes = [16, 8], strides = [1, 1]} : vector<16x96xf32> to vector<16x8xf32>
    %39 = vector.extract_strided_slice %30 {offsets = [0, 64], sizes = [16, 8], strides = [1, 1]} : vector<16x96xf32> to vector<16x8xf32>
    %40 = vector.extract_strided_slice %30 {offsets = [0, 72], sizes = [16, 8], strides = [1, 1]} : vector<16x96xf32> to vector<16x8xf32>
    %41 = vector.extract_strided_slice %30 {offsets = [0, 80], sizes = [16, 8], strides = [1, 1]} : vector<16x96xf32> to vector<16x8xf32>
    %42 = vector.extract_strided_slice %30 {offsets = [0, 88], sizes = [16, 8], strides = [1, 1]} : vector<16x96xf32> to vector<16x8xf32>
    %43 = vector.shape_cast %31 : vector<16x8xf32> to vector<1x16x8xf32>
    %44 = vector.shape_cast %32 : vector<16x8xf32> to vector<1x16x8xf32>
    %45 = vector.shape_cast %33 : vector<16x8xf32> to vector<1x16x8xf32>
    %46 = vector.shape_cast %34 : vector<16x8xf32> to vector<1x16x8xf32>
    %47 = tpu.concatenate %43, %44, %45, %46 in 0 : vector<1x16x8xf32>, vector<1x16x8xf32>, vector<1x16x8xf32>, vector<1x16x8xf32> -> vector<4x16x8xf32>
    %48 = arith.truncf %47 : vector<4x16x8xf32> to vector<4x16x8xbf16>
    %49 = vector.shape_cast %35 : vector<16x8xf32> to vector<1x16x8xf32>
    %50 = vector.shape_cast %36 : vector<16x8xf32> to vector<1x16x8xf32>
    %51 = vector.shape_cast %37 : vector<16x8xf32> to vector<1x16x8xf32>
    %52 = vector.shape_cast %38 : vector<16x8xf32> to vector<1x16x8xf32>
    %53 = tpu.concatenate %49, %50, %51, %52 in 0 : vector<1x16x8xf32>, vector<1x16x8xf32>, vector<1x16x8xf32>, vector<1x16x8xf32> -> vector<4x16x8xf32>
    %54 = arith.truncf %53 : vector<4x16x8xf32> to vector<4x16x8xbf16>
    %55 = vector.shape_cast %39 : vector<16x8xf32> to vector<1x16x8xf32>
    %56 = vector.shape_cast %40 : vector<16x8xf32> to vector<1x16x8xf32>
    %57 = vector.shape_cast %41 : vector<16x8xf32> to vector<1x16x8xf32>
    %58 = vector.shape_cast %42 : vector<16x8xf32> to vector<1x16x8xf32>
    %59 = tpu.concatenate %55, %56, %57, %58 in 0 : vector<1x16x8xf32>, vector<1x16x8xf32>, vector<1x16x8xf32>, vector<1x16x8xf32> -> vector<4x16x8xf32>
    %60 = arith.truncf %59 : vector<4x16x8xf32> to vector<4x16x8xbf16>
    "tpu.trace_start"() <{level = 10 : i32, message = "hqd,hkd->hqk"}> : () -> ()
    %cst_14 = arith.constant dense<0.000000e+00> : vector<4x16x16xf32>
    %61 = tpu.matmul %48, %54, %cst_14 {dimension_numbers = #tpu.dot_dimension_numbers<[2], [2], [1], [1], [0, 0, 0, 1, 1, 1], [0], [0]>} : vector<4x16x8xbf16>, vector<4x16x8xbf16>, vector<4x16x16xf32> -> vector<4x16x16xf32>
    "tpu.trace_stop"() : () -> ()
    %62 = tpu.iota {dimensions = array<i32: 0>} : vector<16x16xi32>
    %63 = tpu.iota {dimensions = array<i32: 1>} : vector<16x16xi32>
    %64 = arith.cmpi sle, %63, %62 : vector<16x16xi32>
    %c8_i32 = arith.constant 8 : i32
    %65 = vector.broadcast %c8_i32 : i32 to vector<16x16xi32>
    %66 = arith.cmpi slt, %63, %65 : vector<16x16xi32>
    %c8_i32_15 = arith.constant 8 : i32
    %67 = vector.broadcast %c8_i32_15 : i32 to vector<16x16xi32>
    %68 = arith.cmpi sge, %62, %67 : vector<16x16xi32>
    %69 = arith.andi %66, %68 : vector<16x16xi1>
    %cst_16 = arith.constant dense<true> : vector<16x16xi1>
    %70 = arith.xori %69, %cst_16 : vector<16x16xi1>
    %71 = arith.andi %64, %70 : vector<16x16xi1>
    %72 = vector.shape_cast %71 : vector<16x16xi1> to vector<1x16x16xi1>
    %cst_17 = arith.constant -1.000000e+30 : f32
    %73 = vector.shape_cast %72 : vector<1x16x16xi1> to vector<1x16x16xi1>
    %74 = vector.broadcast %73 : vector<1x16x16xi1> to vector<4x16x16xi1>
    %75 = vector.broadcast %cst_17 : f32 to vector<4x16x16xf32>
    %76 = arith.select %74, %61, %75 : vector<4x16x16xi1>, vector<4x16x16xf32>
    %cst_18 = arith.constant dense<0xFF800000> : vector<4x16xf32>
    %77 = vector.multi_reduction <maximumf>, %76, %cst_18 [2] : vector<4x16x16xf32> to vector<4x16xf32>
    %78 = vector.shape_cast %77 : vector<4x16xf32> to vector<4x16x1xf32>
    %79 = vector.broadcast %78 : vector<4x16x1xf32> to vector<4x16x16xf32>
    %80 = arith.subf %76, %79 : vector<4x16x16xf32>
    %81 = math.exp %80 : vector<4x16x16xf32>
    %cst_19 = arith.constant dense<0.000000e+00> : vector<4x16xf32>
    %82 = vector.multi_reduction <add>, %81, %cst_19 [2] : vector<4x16x16xf32> to vector<4x16xf32>
    %83 = vector.shape_cast %82 : vector<4x16xf32> to vector<4x16x1xf32>
    %84 = tpu.reciprocal %83 {approx = true} : vector<4x16x1xf32> -> vector<4x16x1xf32>
    %85 = vector.broadcast %84 : vector<4x16x1xf32> to vector<4x16x16xf32>
    %86 = arith.mulf %81, %85 : vector<4x16x16xf32>
    %87 = arith.truncf %86 : vector<4x16x16xf32> to vector<4x16x16xbf16>
    "tpu.trace_start"() <{level = 10 : i32, message = "hqk,hkd->hqd"}> : () -> ()
    %cst_20 = arith.constant dense<0.000000e+00> : vector<4x16x8xf32>
    %88 = tpu.matmul %87, %60, %cst_20 {dimension_numbers = #tpu.dot_dimension_numbers<[2], [1], [1], [2], [0, 0, 0, 1, 1, 2], [0], [0]>} : vector<4x16x16xbf16>, vector<4x16x8xbf16>, vector<4x16x8xf32> -> vector<4x16x8xf32>
    "tpu.trace_stop"() : () -> ()
    %89 = vector.extract_strided_slice %88 {offsets = [0, 0, 0], sizes = [1, 16, 8], strides = [1, 1, 1]} : vector<4x16x8xf32> to vector<1x16x8xf32>
    %90 = vector.shape_cast %89 : vector<1x16x8xf32> to vector<16x8xf32>
    %91 = vector.extract_strided_slice %88 {offsets = [1, 0, 0], sizes = [1, 16, 8], strides = [1, 1, 1]} : vector<4x16x8xf32> to vector<1x16x8xf32>
    %92 = vector.shape_cast %91 : vector<1x16x8xf32> to vector<16x8xf32>
    %93 = vector.extract_strided_slice %88 {offsets = [2, 0, 0], sizes = [1, 16, 8], strides = [1, 1, 1]} : vector<4x16x8xf32> to vector<1x16x8xf32>
    %94 = vector.shape_cast %93 : vector<1x16x8xf32> to vector<16x8xf32>
    %95 = vector.extract_strided_slice %88 {offsets = [3, 0, 0], sizes = [1, 16, 8], strides = [1, 1, 1]} : vector<4x16x8xf32> to vector<1x16x8xf32>
    %96 = vector.shape_cast %95 : vector<1x16x8xf32> to vector<16x8xf32>
    %97 = tpu.concatenate %90, %92, %94, %96 in 1 : vector<16x8xf32>, vector<16x8xf32>, vector<16x8xf32>, vector<16x8xf32> -> vector<16x32xf32>
    %98 = arith.truncf %97 : vector<16x32xf32> to vector<16x32xbf16>
    %c0_21 = arith.constant 0 : index
    %c0_22 = arith.constant 0 : index
    %99 = vector.load %arg5[%c0_21, %c0_22] : memref<32x32xbf16, #tpu.memory_space<vmem>>, vector<32x32xbf16>
    %cst_23 = arith.constant dense<0.000000e+00> : vector<16x32xf32>
    %100 = tpu.matmul %98, %99, %cst_23 {dimension_numbers = #tpu.dot_dimension_numbers<[1], [0], [0], [1], [0, 0, 1, 1], [], []>} : vector<16x32xbf16>, vector<32x32xbf16>, vector<16x32xf32> -> vector<16x32xf32>
    %c0_24 = arith.constant 0 : index
    %c0_25 = arith.constant 0 : index
    %101 = vector.load %arg6[%c0_24, %c0_25] : memref<1x32xf32, #tpu.memory_space<vmem>>, vector<1x32xf32>
    %102 = vector.broadcast %101 : vector<1x32xf32> to vector<16x32xf32>
    %103 = arith.addf %100, %102 : vector<16x32xf32>
    %104 = arith.addf %0, %103 : vector<16x32xf32>
    %c0_26 = arith.constant 0 : index
    %c0_27 = arith.constant 0 : index
    %105 = vector.load %arg7[%c0_26, %c0_27] : memref<1x32xf32, #tpu.memory_space<vmem>>, vector<1x32xf32>
    %c0_28 = arith.constant 0 : index
    %c0_29 = arith.constant 0 : index
    %106 = vector.load %arg8[%c0_28, %c0_29] : memref<1x32xf32, #tpu.memory_space<vmem>>, vector<1x32xf32>
    %cst_30 = arith.constant dense<0.000000e+00> : vector<16xf32>
    %107 = vector.multi_reduction <add>, %104, %cst_30 [1] : vector<16x32xf32> to vector<16xf32>
    %108 = vector.shape_cast %107 : vector<16xf32> to vector<16x1xf32>
    %cst_31 = arith.constant 3.200000e+01 : f32
    %109 = vector.broadcast %cst_31 : f32 to vector<16x1xf32>
    %110 = arith.divf %108, %109 : vector<16x1xf32>
    %111 = vector.broadcast %110 : vector<16x1xf32> to vector<16x32xf32>
    %112 = arith.subf %104, %111 : vector<16x32xf32>
    %113 = arith.mulf %112, %112 : vector<16x32xf32>
    %cst_32 = arith.constant dense<0.000000e+00> : vector<16xf32>
    %114 = vector.multi_reduction <add>, %113, %cst_32 [1] : vector<16x32xf32> to vector<16xf32>
    %115 = vector.shape_cast %114 : vector<16xf32> to vector<16x1xf32>
    %cst_33 = arith.constant 3.200000e+01 : f32
    %116 = vector.broadcast %cst_33 : f32 to vector<16x1xf32>
    %117 = arith.divf %115, %116 : vector<16x1xf32>
    %118 = vector.broadcast %110 : vector<16x1xf32> to vector<16x32xf32>
    %119 = arith.subf %104, %118 : vector<16x32xf32>
    %cst_34 = arith.constant 9.99999974E-6 : f32
    %120 = vector.broadcast %cst_34 : f32 to vector<16x1xf32>
    %121 = arith.addf %117, %120 : vector<16x1xf32>
    %122 = math.rsqrt %121 : vector<16x1xf32>
    %123 = vector.broadcast %122 : vector<16x1xf32> to vector<16x32xf32>
    %124 = arith.mulf %119, %123 : vector<16x32xf32>
    %125 = vector.broadcast %105 : vector<1x32xf32> to vector<16x32xf32>
    %126 = arith.mulf %124, %125 : vector<16x32xf32>
    %127 = vector.broadcast %106 : vector<1x32xf32> to vector<16x32xf32>
    %128 = arith.addf %126, %127 : vector<16x32xf32>
    %129 = arith.truncf %128 : vector<16x32xf32> to vector<16x32xbf16>
    %c0_35 = arith.constant 0 : index
    %c0_36 = arith.constant 0 : index
    %130 = vector.load %arg9[%c0_35, %c0_36] : memref<32x128xbf16, #tpu.memory_space<vmem>>, vector<32x128xbf16>
    %cst_37 = arith.constant dense<0.000000e+00> : vector<16x128xf32>
    %131 = tpu.matmul %129, %130, %cst_37 {dimension_numbers = #tpu.dot_dimension_numbers<[1], [0], [0], [1], [0, 0, 1, 1], [], []>} : vector<16x32xbf16>, vector<32x128xbf16>, vector<16x128xf32> -> vector<16x128xf32>
    %c0_38 = arith.constant 0 : index
    %c0_39 = arith.constant 0 : index
    %132 = vector.load %arg10[%c0_38, %c0_39] : memref<1x128xf32, #tpu.memory_space<vmem>>, vector<1x128xf32>
    %133 = vector.broadcast %132 : vector<1x128xf32> to vector<16x128xf32>
    %134 = arith.addf %131, %133 : vector<16x128xf32>
    %cst_40 = arith.constant 5.000000e-01 : f32
    %135 = vector.broadcast %cst_40 : f32 to vector<16x128xf32>
    %136 = arith.mulf %135, %134 : vector<16x128xf32>
    %137 = arith.mulf %134, %134 : vector<16x128xf32>
    %138 = arith.mulf %137, %134 : vector<16x128xf32>
    %cst_41 = arith.constant 4.471500e-02 : f32
    %139 = vector.broadcast %cst_41 : f32 to vector<16x128xf32>
    %140 = arith.mulf %139, %138 : vector<16x128xf32>
    %141 = arith.addf %134, %140 : vector<16x128xf32>
    %cst_42 = arith.constant 0.797884583 : f32
    %142 = vector.broadcast %cst_42 : f32 to vector<16x128xf32>
    %143 = arith.mulf %142, %141 : vector<16x128xf32>
    %144 = math.tanh %143 : vector<16x128xf32>
    %cst_43 = arith.constant 1.000000e+00 : f32
    %145 = vector.broadcast %cst_43 : f32 to vector<16x128xf32>
    %146 = arith.addf %145, %144 : vector<16x128xf32>
    %147 = arith.mulf %136, %146 : vector<16x128xf32>
    %148 = arith.truncf %147 : vector<16x128xf32> to vector<16x128xbf16>
    %c0_44 = arith.constant 0 : index
    %c0_45 = arith.constant 0 : index
    %149 = vector.load %arg11[%c0_44, %c0_45] : memref<128x32xbf16, #tpu.memory_space<vmem>>, vector<128x32xbf16>
    %cst_46 = arith.constant dense<0.000000e+00> : vector<16x32xf32>
    %150 = tpu.matmul %148, %149, %cst_46 {dimension_numbers = #tpu.dot_dimension_numbers<[1], [0], [0], [1], [0, 0, 1, 1], [], []>} : vector<16x128xbf16>, vector<128x32xbf16>, vector<16x32xf32> -> vector<16x32xf32>
    %c0_47 = arith.constant 0 : index
    %c0_48 = arith.constant 0 : index
    %151 = vector.load %arg12[%c0_47, %c0_48] : memref<1x32xf32, #tpu.memory_space<vmem>>, vector<1x32xf32>
    %152 = vector.broadcast %151 : vector<1x32xf32> to vector<16x32xf32>
    %153 = arith.addf %150, %152 : vector<16x32xf32>
    %154 = arith.addf %104, %153 : vector<16x32xf32>
    %c0_49 = arith.constant 0 : index
    %c0_50 = arith.constant 0 : index
    %155 = vector.load %arg13[%c0_49, %c0_50] : memref<16x32xf32, #tpu.memory_space<vmem>>, vector<16x32xf32>
    tpu.vector_store %arg13[%c0_49, %c0_50], %154 {strides = array<i32>} : memref<16x32xf32, #tpu.memory_space<vmem>>, vector<16x32xf32>,
    return
  }
}

</mosaic_0001>

<bundles_post_ra>
// kernel: tpu_custom_call.1
= control target key start
LH: loop header
LB: loop body
LE: loop exit
PB: predicated region body
PF: predicated region fallthrough
CT: control target
= control target key end

     0   :  { %vm50_vm0 = vcmask 261120   ;;  %s1653_s0 = inlined_call_operand.vmem [shape: f32[16,32], index: 0, kind: input, shape index: {}]   ;;  %s1654_s1 = inlined_call_operand.vmem [shape: f32[1,32], index: 1, kind: input, shape index: {}]   ;;  %s1655_s2 = inlined_call_operand.vmem [shape: f32[1,32], index: 2, kind: input, shape index: {}]   ;;  %s1656_s3 = inlined_call_operand.vmem [shape: bf16[32,96], index: 3, kind: input, shape index: {}]   ;;  %s1657_s4 = inlined_call_operand.vmem [shape: f32[1,96], index: 4, kind: input, shape index: {}]   ;;  %s1658_s5 = inlined_call_operand.vmem [shape: bf16[32,32], index: 5, kind: input, shape index: {}]   ;;  %s1659_s6 = inlined_call_operand.vmem [shape: f32[1,32], index: 6, kind: input, shape index: {}]   ;;  %s1660_s7 = inlined_call_operand.vmem [shape: f32[1,32], index: 7, kind: input, shape index: {}]   ;;  %s1661_s8 = inlined_call_operand.vmem [shape: f32[1,32], index: 8, kind: input, shape index: {}]   ;;  %s1662_s9 = inlined_call_operand.vmem [shape: bf16[32,128], index: 9, kind: input, shape index: {}]   ;;  %s1663_s10 = inlined_call_operand.vmem [shape: f32[1,128], index: 10, kind: input, shape index: {}]   ;;  %s1664_s11 = inlined_call_operand.vmem [shape: bf16[128,32], index: 11, kind: input, shape index: {}]   ;;  %s1665_s12 = inlined_call_operand.vmem [shape: f32[1,32], index: 12, kind: input, shape index: {}]   ;;  %s1666_s13 = inlined_call_operand.hbm [shape: f32[16,32], index: 13, kind: output, shape index: {}]  }
   0x1   :  { %v1428_v0 = vld [vmem:[%s1653_s0] sm:$0xff]  ;;  %v1433_v1 = vld [vmem:[%s1653_s0 + $0x8] sm:$0xff] }
   0x2   :  { %v51_v2 = vsel %vm50_vm0, %v1428_v0, 0.0  ;;  %v54_v3 = vsel %vm50_vm0, %v1433_v1, 0.0 }
   0x3   :  { %52 = vadd.xlane.f32.xlu0 %v51_v2 }
   0x7   :  { %55 = vadd.xlane.f32.xlu0 %v54_v3 }
   0x8   :  { %18 = vsyncpa [#allocation3], 0  ;;  %v1262_v14 = vld [vmem:[%s1656_s3 + $0x8] sm:$0xff]   ;;  %v1342_v15 = vmov 0.0   ;;  %vm1343_vm1 = vmmov 0   ;;  %v1263_v16 = vld [vmem:[%s1656_s3] sm:$0xff]   ;;  %v387_v63 = vlaneseq }
   0x9   :  { %1127 = vmatprep.subr.bf16.mxu0 %v1342_v15  ;;  %1131 = vmatprep.mubr.msk.bf16.mxu0 %vm1343_vm1, %v1342_v15  ;;  %v1060_v25 = vld [vmem:[%s1654_s1] ss:$0 sm:$0xff]  ;;  %s1344_s1 = smov 112   ;;  %s1346_s20 = smov 104   ;;  %vm189_vm2 = vcmask 64512   ;;  %vm415_vm5 = vcmask 130048  }
   0xa   :  { %1128 = vmatpush3.bf16.msra.mxu0 %v1262_v14  ;;  %1147 = vmatprep.subr.bf16.mxu1 %v1342_v15  ;;  %v1061_v29 = vld [vmem:[%s1655_s2] ss:$0 sm:$0xff]  ;;  %s1345_s2 = smov 120   ;;  %s1347_s21 = smov 96   ;;  %v388_v2 = vshrl.u32 %v387_v63, 7  ;;  %v391_v3 = vand.u32 127, %v387_v63 }
   0xb   :  { %1129 = vmatprep.subr.bf16.mxu0 %v1342_v15  ;;  %1149 = vmatprep.mubr.msk.bf16.mxu1 %vm1343_vm1, %v1342_v15  ;;  %v1062_v35 = vld [vmem:[%s1657_s4] ss:$0 sm:$0xff]  ;;  %vm1348_vm7 = vmmov 1   ;;  %s1349_s4 = smov 64   ;;  %s1350_s26 = smov 8   ;;  %vm724_vm10 = vcmask 195584  }
   0xc   :  { %vm394_vm3 = vcmp.lt.s32.totalorder %v391_v3, 8  ;;  %vm392_vm4 = vcmp.le.s32.totalorder %v391_v3, %v388_v2  ;;  %s1351_s27 = smov 16  }
   0xd   :  { %vm400_vm8 = vmxor %vm394_vm3, %vm1348_vm7 }
   0xe   :  { %1130 = vmatpush3.bf16.msra.mxu0 %v1263_v16 }
   0xf   :  { %1135 = vmatprep.subr.bf16.mxu0 %v1342_v15 }
  0x8c   :  { %v53_v4 = vpop.xlane.xlu0 %52 }
  0x8d   :  { %v58_v5 = vmul.f32 0.03125, %v53_v4  ;;  %v389_v4 = vadd.s32 8, %v388_v2 }
  0x8f   :  { %v60_v6 = vsub.f32 %v1428_v0, %v58_v5  ;;  %vm393_vm6 = vcmp.le.s32.totalorder %v391_v3, %v389_v4 }
  0x90   :  { %v56_v7 = vpop.xlane.xlu0 %55  ;;  %vm1507_vm9 = vmand %vm393_vm6, %vm400_vm8 }
  0x91   :  { %v59_v8 = vmul.f32 0.03125, %v56_v7  ;;  %v62_v9 = vmul.f32 %v60_v6, %v60_v6 }
  0x93   :  { %v61_v10 = vsub.f32 %v1433_v1, %v59_v8  ;;  %v64_v11 = vsel %vm50_vm0, %v62_v9, 0.0 }
  0x94   :  { %65 = vadd.xlane.f32.xlu1 %v64_v11 }
  0x95   :  { %v63_v12 = vmul.f32 %v61_v10, %v61_v10 }
  0x97   :  { %v67_v13 = vsel %vm50_vm0, %v63_v12, 0.0 }
  0x98   :  { %68 = vadd.xlane.f32.xlu1 %v67_v13 }
 0x11d   :  { %v66_v17 = vpop.xlane.xlu1 %65 }
 0x11e   :  { %v70_v18 = vmul.f32 0.03125, %v66_v17 }
 0x120   :  { %v72_v19 = vadd.f32 1e-05, %v70_v18 }
 0x121   :  { %v69_v20 = vpop.xlane.xlu1 %68 }
 0x122   :  { %1276 = vrsqrt.f32 %v72_v19  ;;  %v71_v21 = vmul.f32 0.03125, %v69_v20 }
 0x124   :  { %v73_v22 = vadd.f32 1e-05, %v71_v21 }
 0x126   :  { %1278 = vrsqrt.f32 %v73_v22 }
 0x12f   :  { %v1277_v23 = vpop.eup %1276 }
 0x130   :  { %v76_v24 = vmul.f32 %v1277_v23, %v60_v6 }
 0x132   :  { %v84_v28 = vmul.f32 %v1060_v25, %v76_v24 }
 0x133   :  { %v1279_v26 = vpop.eup %1278 }
 0x134   :  { %v77_v27 = vmul.f32 %v1279_v26, %v61_v10  ;;  %v92_v31 = vadd.f32 %v1061_v29, %v84_v28 }
 0x136   :  { %v85_v30 = vmul.f32 %v1060_v25, %v77_v27 }
 0x138   :  { %v93_v32 = vadd.f32 %v1061_v29, %v85_v30 }
 0x13a   :  { %v94_v33 = vpack.c.bf16 %v93_v32, %v92_v31 }
 0x13c   :  { %1132 = vmatmul.mubr.msk.bf16.vlgmr.msra.gmra.mxu0 %vm50_vm0, %v94_v33 }
 0x13d   :  { %1137 = vmatprep.mubr.msk.bf16.mxu0 %vm1343_vm1, %v1342_v15 }
 0x1fc   :  { %v155_v34 = vpop.f32.mrf.mxu0 }
 0x1fd   :  { %v156_v38 = vadd.f32 %v1062_v35, %v155_v34 }
 0x1fe   :  { %v1133_v36 = vpop.f32.mrf.mxu0 }
 0x200   :  { %v158_v37 = vpop.f32.mrf.mxu0 }
 0x201   :  { %v159_v39 = vadd.f32 %v1062_v35, %v158_v37 }
 0x202   :  { %v1134_v40 = vpop.f32.mrf.mxu0 }
 0x203   :  { %v1237_v41 = vpack.i.bf16 %v159_v39, %v156_v38  ;;  %v1469_v42 = vpack.c.bf16 %v159_v39, %v156_v38 }
 0x205   :  { %1238 = vrot.lane.b32.xlu1 %v1237_v41, %s1344_s1  ;;  %1233 = vrot.lane.b32.xlu0 %v1237_v41, %s1345_s2 }
 0x209   :  { %1243 = vrot.lane.b32.xlu1 %v1237_v41, %s1346_s20 }
 0x20d   :  { %187 = vrot.lane.b32.xlu1 %v1469_v42, %s1347_s21 }
 0x277   :  { %v1239_v43 = vpop.permute.xlu1 %1238  ;;  %v1234_v44 = vpop.permute.xlu0 %1233 }
 0x278   :  { %v1241_v45 = vunpack.i.h.bf16 %v1239_v43  ;;  %v1240_v46 = vunpack.i.l.bf16 %v1239_v43  ;;  %v1236_v47 = vunpack.i.h.bf16 %v1234_v44  ;;  %v1235_v48 = vunpack.i.l.bf16 %v1234_v44 }
 0x27a   :  { %v1472_v49 = vpack.c.bf16 %v1241_v45, %v1240_v46  ;;  %v1474_v50 = vpack.c.bf16 %v1236_v47, %v1235_v48 }
 0x27b   :  { %v1244_v51 = vpop.permute.xlu1 %1243 }
 0x27c   :  { %v1246_v52 = vunpack.i.h.bf16 %v1244_v51  ;;  %v1245_v53 = vunpack.i.l.bf16 %v1244_v51  ;;  %238 = vrot.lane.b32.xlu0 %v1474_v50, %s1347_s21  ;;  %288 = vrot.lane.b32.xlu1 %v1472_v49, %s1347_s21 }
 0x27e   :  { %v1478_v54 = vpack.c.bf16 %v1246_v52, %v1245_v53 }
 0x27f   :  { %v188_v55 = vpop.permute.xlu1 %187 }
 0x280   :  { %v194_v56 = vsel %vm189_vm2, %v188_v55, 0  ;;  %338 = vrot.lane.b32.xlu0 %v1478_v54, %s1347_s21 }
 0x281   :  { %1136 = vmatpush3.bf16.xpose.msra.mxu0 %v194_v56 }
 0x282   :  { %1141 = vmatprep.subr.bf16.mxu0 %v1342_v15 }
 0x288   :  { %1138 = vmatmul.mubr.msk.bf16.vlgmr.msra.gmra.mxu0 %vm189_vm2, %v1469_v42 }
 0x289   :  { %1143 = vmatprep.mubr.msk.bf16.mxu0 %vm1343_vm1, %v1342_v15 }
 0x2ee   :  { %v239_v57 = vpop.permute.xlu0 %238  ;;  %v289_v58 = vpop.permute.xlu1 %288 }
 0x2ef   :  { %v244_v59 = vsel %vm189_vm2, %v239_v57, 0  ;;  %v294_v60 = vsel %vm189_vm2, %v289_v58, 0 }
 0x2f0   :  { %1142 = vmatpush3.bf16.xpose.msra.mxu0 %v244_v59  ;;  %1148 = vmatpush3.bf16.xpose.msra.mxu1 %v294_v60 }
 0x2f1   :  { %1153 = vmatprep.subr.bf16.mxu0 %v1342_v15  ;;  %1159 = vmatprep.subr.bf16.mxu1 %v1342_v15 }
 0x2f2   :  { %v339_v61 = vpop.permute.xlu0 %338 }
 0x2f3   :  { %v344_v62 = vsel %vm189_vm2, %v339_v61, 0 }
 0x2f7   :  { %1144 = vmatmul.mubr.msk.bf16.vlgmr.msra.gmra.mxu0 %vm189_vm2, %v1474_v50  ;;  %1150 = vmatmul.mubr.msk.bf16.vlgmr.msra.gmra.mxu1 %vm189_vm2, %v1472_v49 }
 0x2f8   :  { %1154 = vmatpush3.bf16.xpose.msra.mxu0 %v344_v62  ;;  %1155 = vmatprep.mubr.msk.bf16.mxu0 %vm1343_vm1, %v1342_v15 }
 0x2f9   :  { %1161 = vmatprep.mubr.msk.bf16.mxu1 %vm1343_vm1, %v1342_v15  ;;  %1165 = vmatprep.subr.bf16.mxu0 %v1342_v15 }
 0x2ff   :  { %1156 = vmatmul.mubr.msk.bf16.vlgmr.msra.gmra.mxu0 %vm189_vm2, %v1478_v54 }
 0x300   :  { %1167 = vmatprep.mubr.msk.bf16.mxu0 %vm1343_vm1, %v1342_v15 }
 0x348   :  { %v230_v5 = vpop.f32.mrf.mxu0 }
 0x349   :  { %v407_v6 = vsel %vm392_vm4, %v230_v5, -1e+30 }
 0x34a   :  { %v1139_v7 = vpop.f32.mrf.mxu0  ;;  %v416_v8 = vsel %vm415_vm5, %v407_v6, -inf }
 0x34b   :  { %417 = vmax.xlane.f32.xlu1 %v416_v8 }
 0x34c   :  { %v233_v10 = vpop.f32.mrf.mxu0 }
 0x34d   :  { %v408_v11 = vsel %vm1507_vm9, %v233_v10, -1e+30 }
 0x34e   :  { %v1140_v12 = vpop.f32.mrf.mxu0  ;;  %v419_v13 = vsel %vm415_vm5, %v408_v11, -inf }
 0x34f   :  { %420 = vmax.xlane.f32.xlu0 %v419_v13 }
 0x3b7   :  { %v280_v14 = vpop.f32.mrf.mxu0  ;;  %v330_v16 = vpop.f32.mrf.mxu1 }
 0x3b8   :  { %v409_v17 = vsel %vm392_vm4, %v280_v14, -1e+30  ;;  %v411_v18 = vsel %vm392_vm4, %v330_v16, -1e+30 }
 0x3b9   :  { %v1145_v19 = vpop.f32.mrf.mxu0  ;;  %v1151_v20 = vpop.f32.mrf.mxu1  ;;  %v428_v21 = vsel %vm415_vm5, %v411_v18, -inf  ;;  %v422_v22 = vsel %vm415_vm5, %v409_v17, -inf }
 0x3ba   :  { %429 = vmax.xlane.f32.xlu1 %v428_v21  ;;  %423 = vmax.xlane.f32.xlu0 %v422_v22 }
 0x3bb   :  { %v283_v23 = vpop.f32.mrf.mxu0  ;;  %v333_v24 = vpop.f32.mrf.mxu1 }
 0x3bc   :  { %v410_v25 = vsel %vm1507_vm9, %v283_v23, -1e+30  ;;  %v412_v29 = vsel %vm1507_vm9, %v333_v24, -1e+30 }
 0x3bd   :  { %v1146_v26 = vpop.f32.mrf.mxu0  ;;  %v1152_v27 = vpop.f32.mrf.mxu1  ;;  %v425_v28 = vsel %vm415_vm5, %v410_v25, -inf  ;;  %v431_v33 = vsel %vm415_vm5, %v412_v29, -inf }
 0x3be   :  { %426 = vmax.xlane.f32.xlu0 %v425_v28 }
 0x3bf   :  { %v380_v30 = vpop.f32.mrf.mxu0 }
 0x3c0   :  { %v413_v31 = vsel %vm392_vm4, %v380_v30, -1e+30 }
 0x3c1   :  { %v1157_v32 = vpop.f32.mrf.mxu0  ;;  %v434_v34 = vsel %vm415_vm5, %v413_v31, -inf }
 0x3c2   :  { %432 = vmax.xlane.f32.xlu0 %v431_v33  ;;  %435 = vmax.xlane.f32.xlu1 %v434_v34 }
 0x3c3   :  { %v383_v35 = vpop.f32.mrf.mxu0 }
 0x3c4   :  { %v414_v36 = vsel %vm1507_vm9, %v383_v35, -1e+30 }
 0x3c5   :  { %v1158_v37 = vpop.f32.mrf.mxu0  ;;  %v437_v38 = vsel %vm415_vm5, %v414_v36, -inf }
 0x3c6   :  { %438 = vmax.xlane.f32.xlu0 %v437_v38 }
 0x3d3   :  { %508 = vrot.lane.b32.xlu1 %v1469_v42, %s1349_s4 }
 0x3d4   :  { %v418_v41 = vpop.xlane.xlu1 %417 }
 0x3d5   :  { %v440_v44 = vsub.f32 %v407_v6, %v418_v41 }
 0x3d7   :  { %v448_v45 = vmul.f32 1.442695, %v440_v44 }
 0x3d8   :  { %v421_v39 = vpop.xlane.xlu0 %420 }
 0x3d9   :  { %v441_v40 = vsub.f32 %v408_v11, %v421_v39 }
 0x3db   :  { %v450_v43 = vmul.f32 1.442695, %v441_v40 }
 0x3dd   :  { %1280 = vpow2.f32 %v450_v43 }
 0x3de   :  { %1282 = vpow2.f32 %v448_v45 }
 0x3ea   :  { %v1281_v46 = vpop.eup %1280 }
 0x3eb   :  { %v467_v47 = vsel %vm415_vm5, %v1281_v46, 0.0  ;;  %v1283_v48 = vpop.eup %1282 }
 0x3ec   :  { %468 = vadd.xlane.f32.xlu0 %v467_v47  ;;  %v464_v51 = vsel %vm415_vm5, %v1283_v48, 0.0 }
 0x3f7   :  { %465 = vadd.xlane.f32.xlu1 %v464_v51 }
 0x443   :  { %v430_v52 = vpop.xlane.xlu1 %429  ;;  %v424_v53 = vpop.xlane.xlu0 %423 }
 0x444   :  { %v444_v55 = vsub.f32 %v411_v18, %v430_v52  ;;  %v442_v42 = vsub.f32 %v409_v17, %v424_v53 }
 0x446   :  { %v452_v56 = vmul.f32 1.442695, %v442_v42  ;;  %v456_v57 = vmul.f32 1.442695, %v444_v55 }
 0x447   :  { %v427_v58 = vpop.xlane.xlu0 %426 }
 0x448   :  { %v443_v59 = vsub.f32 %v410_v25, %v427_v58  ;;  %1284 = vpow2.f32 %v452_v56 }
 0x449   :  { %1286 = vpow2.f32 %v456_v57  ;;  %v1264_v57 = vld [vmem:[%s1658_s5 + $0x8] sm:$0xff]  }
 0x44a   :  { %v454_v60 = vmul.f32 1.442695, %v443_v59 }
 0x44b   :  { %v433_v61 = vpop.xlane.xlu0 %432  ;;  %v436_v62 = vpop.xlane.xlu1 %435 }
 0x44c   :  { %1288 = vpow2.f32 %v454_v60  ;;  %v445_v63 = vsub.f32 %v412_v29, %v433_v61  ;;  %v446_v2 = vsub.f32 %v413_v31, %v436_v62  ;;  %v1265_v60 = vld [vmem:[%s1658_s5] sm:$0xff]   ;;  %s1352_s5 = smov 24  }
 0x44e   :  { %v458_v3 = vmul.f32 1.442695, %v445_v63  ;;  %v460_v4 = vmul.f32 1.442695, %v446_v2 }
 0x44f   :  { %v509_v5 = vpop.permute.xlu1 %508  ;;  %v439_v6 = vpop.xlane.xlu0 %438 }
 0x450   :  { %1290 = vpow2.f32 %v458_v3  ;;  %v447_v7 = vsub.f32 %v414_v36, %v439_v6  ;;  %1160 = vmatpush3.bf16.msra.mxu1 %v509_v5 }
 0x451   :  { %1292 = vpow2.f32 %v460_v4  ;;  %1171 = vmatprep.subr.bf16.mxu1 %v1342_v15 }
 0x452   :  { %v462_v8 = vmul.f32 1.442695, %v447_v7 }
 0x454   :  { %1294 = vpow2.f32 %v462_v8 }
 0x455   :  { %v1285_v9 = vpop.eup %1284 }
 0x456   :  { %v470_v10 = vsel %vm415_vm5, %v1285_v9, 0.0  ;;  %v1287_v11 = vpop.eup %1286 }
 0x457   :  { %471 = vadd.xlane.f32.xlu1 %v470_v10  ;;  %v476_v14 = vsel %vm415_vm5, %v1287_v11, 0.0 }
 0x459   :  { %v1289_v12 = vpop.eup %1288 }
 0x45a   :  { %v473_v13 = vsel %vm415_vm5, %v1289_v12, 0.0 }
 0x45b   :  { %474 = vadd.xlane.f32.xlu0 %v473_v13  ;;  %477 = vadd.xlane.f32.xlu1 %v476_v14 }
 0x45d   :  { %v1291_v16 = vpop.eup %1290 }
 0x45e   :  { %v1293_v17 = vpop.eup %1292  ;;  %v479_v18 = vsel %vm415_vm5, %v1291_v16, 0.0 }
 0x45f   :  { %v482_v19 = vsel %vm415_vm5, %v1293_v17, 0.0  ;;  %480 = vadd.xlane.f32.xlu0 %v479_v18 }
 0x460   :  { %483 = vadd.xlane.f32.xlu1 %v482_v19 }
 0x461   :  { %v1295_v20 = vpop.eup %1294 }
 0x462   :  { %v485_v21 = vsel %vm415_vm5, %v1295_v20, 0.0 }
 0x463   :  { %486 = vadd.xlane.f32.xlu0 %v485_v21 }
 0x471   :  { %602 = vrot.lane.b32.xlu1 %v1472_v49, %s1349_s4 }
 0x475   :  { %649 = vrot.lane.b32.xlu1 %v1478_v54, %s1349_s4  ;;  %v469_v22 = vpop.xlane.xlu0 %468 }
 0x476   :  { %1296 = vrcp.f32 %v469_v22 }
 0x479   :  { %555 = vrot.lane.b32.xlu0 %v1474_v50, %s1349_s4 }
 0x480   :  { %v466_v23 = vpop.xlane.xlu1 %465 }
 0x481   :  { %1298 = vrcp.f32 %v466_v23 }
 0x483   :  { %v1297_v24 = vpop.eup %1296 }
 0x484   :  { %v497_v27 = vmul.f32 %v1297_v24, %v1281_v46 }
 0x48e   :  { %v1299_v25 = vpop.eup %1298 }
 0x48f   :  { %v496_v26 = vmul.f32 %v1299_v25, %v1283_v48 }
 0x491   :  { %v504_v28 = vpack.c.bf16 %v497_v27, %v496_v26 }
 0x493   :  { %1162 = vmatmul.mubr.msk.bf16.vlgmr.msra.gmra.mxu1 %vm415_vm5, %v504_v28 }
 0x494   :  { %1173 = vmatprep.mubr.msk.bf16.mxu1 %vm1343_vm1, %v1342_v15 }
 0x4e0   :  { %v472_v49 = vpop.xlane.xlu1 %471 }
 0x4e1   :  { %1300 = vrcp.f32 %v472_v49  ;;  %v1074_v49 = vld [vmem:[%s1659_s6] ss:$0 sm:$0xff]  ;;  %s1353_s6 = smov [#allocation2]  }
 0x4e2   :  { %s1049_s29 = sshll.u32 %s1353_s6, 4  ;;  %s1050_s29 = int_to_ptr.vmem [resolvable:$true] %s1049_s29 }
 0x4e3   :  { %s1320_s30 = scalar_lea.vmem %s1050_s29, 256  ;;  %p1325_p1 = scmp.lt.s32.totalorder %s1050_s29, %s1050_s29 }
 0x4e4   :  { %v475_v54 = vpop.xlane.xlu0 %474  ;;  %v478_v29 = vpop.xlane.xlu1 %477  ;;  %p1321_p0 = scmp.ne.s32.totalorder %s1050_s29, %s1320_s30  ;;  %p1326_p2 = scmp.lt.s32.totalorder %s1320_s30, %s1320_s30 }
 0x4e5   :  { %1302 = vrcp.f32 %v475_v54 }
 0x4e6   :  { %1304 = vrcp.f32 %v478_v29  ;;  %p1327_p3 = por %p1326_p2, %p1325_p1 }
 0x4e8   :  { %v481_v50 = vpop.xlane.xlu0 %480  ;;  %p1328_p4 = pnand %p1327_p3, %p1321_p0 }
 0x4e9   :  { %v484_v30 = vpop.xlane.xlu1 %483  ;;  %1306 = vrcp.f32 %v481_v50 }
 0x4ea   :  { %1308 = vrcp.f32 %v484_v30 }
 0x4ec   :  { %v487_v31 = vpop.xlane.xlu0 %486 }
 0x4ed   :  { %v603_v32 = vpop.permute.xlu1 %602  ;;  %1310 = vrcp.f32 %v487_v31 }
 0x4ee   :  { %1172 = vmatpush3.bf16.msra.mxu1 %v603_v32  ;;  %v1301_v33 = vpop.eup %1300 }
 0x4ef   :  { %1183 = vmatprep.subr.bf16.mxu1 %v1342_v15  ;;  %v498_v36 = vmul.f32 %v1301_v33, %v1285_v9 }
 0x4f0   :  { %v556_v34 = vpop.permute.xlu0 %555 }
 0x4f1   :  { %1166 = vmatpush3.bf16.msra.mxu0 %v556_v34  ;;  %v650_v41 = vpop.permute.xlu1 %649 }
 0x4f2   :  { %v1303_v35 = vpop.eup %1302  ;;  %1177 = vmatprep.subr.bf16.mxu0 %v1342_v15 }
 0x4f3   :  { %v499_v37 = vmul.f32 %v1303_v35, %v1289_v12  ;;  %v1305_v38 = vpop.eup %1304 }
 0x4f4   :  { %v500_v43 = vmul.f32 %v1305_v38, %v1287_v11 }
 0x4f5   :  { %v505_v39 = vpack.c.bf16 %v499_v37, %v498_v36 }
 0x4f6   :  { %v1307_v40 = vpop.eup %1306 }
 0x4f7   :  { %1168 = vmatmul.mubr.msk.bf16.vlgmr.msra.gmra.mxu0 %vm415_vm5, %v505_v39  ;;  %v501_v44 = vmul.f32 %v1307_v40, %v1291_v16  ;;  %v1309_v45 = vpop.eup %1308 }
 0x4f8   :  { %1178 = vmatpush3.bf16.msra.mxu0 %v650_v41  ;;  %1179 = vmatprep.mubr.msk.bf16.mxu0 %vm1343_vm1, %v1342_v15  ;;  %v502_v48 = vmul.f32 %v1309_v45, %v1293_v17 }
 0x4f9   :  { %v506_v46 = vpack.c.bf16 %v501_v44, %v500_v43  ;;  %1191 = vmatprep.subr.bf16.mxu0 %v1342_v15 }
 0x4fa   :  { %v1311_v47 = vpop.eup %1310 }
 0x4fb   :  { %1174 = vmatmul.mubr.msk.bf16.vlgmr.msra.gmra.mxu1 %vm415_vm5, %v506_v46  ;;  %v503_v51 = vmul.f32 %v1311_v47, %v1295_v20  ;;  %v1266_v46 = vld [vmem:[%s1662_s9 + $0x8] sm:$0xff]   ;;  %v1267_v47 = vld [vmem:[%s1662_s9] sm:$0xff]  }
 0x4fc   :  { %1187 = vmatprep.mubr.msk.bf16.mxu1 %vm1343_vm1, %v1342_v15  ;;  %1184 = vmatpush3.bf16.msra.mxu1 %v1264_v57 }
 0x4fd   :  { %v507_v52 = vpack.c.bf16 %v503_v51, %v502_v48  ;;  %1185 = vmatprep.subr.bf16.mxu1 %v1342_v15 }
 0x4ff   :  { %1180 = vmatmul.mubr.msk.bf16.vlgmr.msra.gmra.mxu0 %vm415_vm5, %v507_v52 }
 0x500   :  { %1195 = vmatprep.mubr.msk.bf16.mxu0 %vm1343_vm1, %v1342_v15  ;;  %1186 = vmatpush3.bf16.msra.mxu1 %v1265_v60 }
 0x501   :  { %1199 = vmatprep.subr.bf16.mxu1 %v1342_v15  ;;  %1192 = vmatpush3.bf16.msra.mxu0 %v1266_v46 }
 0x502   :  { %1193 = vmatprep.subr.bf16.mxu0 %v1342_v15 }
 0x505   :  { %1194 = vmatpush3.bf16.msra.mxu0 %v1267_v47 }
 0x553   :  { %v548_v53 = vpop.f32.mrf.mxu1 }
 0x555   :  { %v1163_v55 = vpop.f32.mrf.mxu1 }
 0x557   :  { %v551_v42 = vpop.f32.mrf.mxu1 }
 0x559   :  { %v1164_v56 = vpop.f32.mrf.mxu1 }
 0x5b7   :  { %v595_v58 = vpop.f32.mrf.mxu0 }
 0x5b9   :  { %v1169_v59 = vpop.f32.mrf.mxu0 }
 0x5bb   :  { %v598_v61 = vpop.f32.mrf.mxu0  ;;  %v642_v62 = vpop.f32.mrf.mxu1 }
 0x5bc   :  { %v1247_v63 = vpack.i.bf16 %v598_v61, %v595_v58  ;;  %v1078_v58 = vld [vmem:[%s1660_s7] ss:$0 sm:$0xff] }
 0x5bd   :  { %v1170_v2 = vpop.f32.mrf.mxu0  ;;  %v1175_v3 = vpop.f32.mrf.mxu1 }
 0x5be   :  { %1248 = vrot.lane.b32.xlu1 %v1247_v63, %s1350_s26 }
 0x5bf   :  { %v645_v4 = vpop.f32.mrf.mxu1  ;;  %v689_v5 = vpop.f32.mrf.mxu0 }
 0x5c0   :  { %v1252_v6 = vpack.i.bf16 %v645_v4, %v642_v62  ;;  %v1079_v62 = vld [vmem:[%s1661_s8] ss:$0 sm:$0xff] }
 0x5c1   :  { %v1176_v7 = vpop.f32.mrf.mxu1  ;;  %v1181_v8 = vpop.f32.mrf.mxu0 }
 0x5c2   :  { %1253 = vrot.lane.b32.xlu0 %v1252_v6, %s1351_s27  ;;  %v1269_v6 = vld [vmem:[%s1664_s11 + $0x30] sm:$0xff]   ;;  %v1270_v7 = vld [vmem:[%s1664_s11 + $0x28] sm:$0xff]   ;;  %v1271_v8 = vld [vmem:[%s1664_s11 + $0x20] sm:$0xff]  }
 0x5c3   :  { %v692_v9 = vpop.f32.mrf.mxu0 }
 0x5c4   :  { %v1257_v10 = vpack.i.bf16 %v692_v9, %v689_v5  ;;  %v1268_v5 = vld [vmem:[%s1664_s11 + $0x38] sm:$0xff]  }
 0x5c5   :  { %v1182_v11 = vpop.f32.mrf.mxu0  ;;  %v1272_v9 = vld [vmem:[%s1664_s11 + $0x18] sm:$0xff]  }
 0x5c6   :  { %1258 = vrot.lane.b32.xlu1 %v1257_v10, %s1352_s5  ;;  %v1273_v10 = vld [vmem:[%s1664_s11 + $0x10] sm:$0xff]   ;;  %v1274_v11 = vld [vmem:[%s1664_s11 + $0x8] sm:$0xff]  }
 0x630   :  { %v1249_v12 = vpop.permute.xlu1 %1248 }
 0x631   :  { %v1251_v14 = vunpack.i.h.bf16 %v1249_v12  ;;  %v1250_v16 = vunpack.i.l.bf16 %v1249_v12  ;;  %v1275_v12 = vld [vmem:[%s1664_s11] sm:$0xff]  }
 0x633   :  { %v721_v20 = vsel %vm189_vm2, %v551_v42, %v1251_v14  ;;  %v720_v21 = vsel %vm189_vm2, %v548_v53, %v1250_v16 }
 0x634   :  { %v1254_v13 = vpop.permute.xlu0 %1253 }
 0x635   :  { %v1256_v17 = vunpack.i.h.bf16 %v1254_v13  ;;  %v1255_v18 = vunpack.i.l.bf16 %v1254_v13  ;;  %v1080_v13 = vld [vmem:[%s1663_s10] ss:$0 sm:$0xff] }
 0x637   :  { %v722_v24 = vsel %vm415_vm5, %v720_v21, %v1255_v18  ;;  %v723_v25 = vsel %vm415_vm5, %v721_v20, %v1256_v17 }
 0x638   :  { %v1259_v19 = vpop.permute.xlu1 %1258 }
 0x639   :  { %v1261_v22 = vunpack.i.h.bf16 %v1259_v19  ;;  %v1260_v23 = vunpack.i.l.bf16 %v1259_v19 }
 0x63b   :  { %v726_v26 = vsel %vm724_vm10, %v723_v25, %v1261_v22  ;;  %v725_v27 = vsel %vm724_vm10, %v722_v24, %v1260_v23 }
 0x63c   :  { %v727_v28 = vpack.c.bf16 %v726_v26, %v725_v27 }
 0x63e   :  { %1188 = vmatmul.mubr.msk.bf16.vlgmr.msra.gmra.mxu1 %vm50_vm0, %v727_v28 }
 0x63f   :  { %1215 = vmatprep.mubr.msk.bf16.mxu1 %vm1343_vm1, %v1342_v15  ;;  %1200 = vmatpush3.bf16.msra.mxu1 %v1268_v5 }
 0x640   :  { %1201 = vmatprep.subr.bf16.mxu1 %v1342_v15 }
 0x643   :  { %1202 = vmatpush3.bf16.msra.mxu1 %v1269_v6 }
 0x644   :  { %1203 = vmatprep.subr.bf16.mxu1 %v1342_v15 }
 0x647   :  { %1204 = vmatpush3.bf16.msra.mxu1 %v1270_v7 }
 0x648   :  { %1205 = vmatprep.subr.bf16.mxu1 %v1342_v15 }
 0x64b   :  { %1206 = vmatpush3.bf16.msra.mxu1 %v1271_v8 }
 0x64c   :  { %1207 = vmatprep.subr.bf16.mxu1 %v1342_v15 }
 0x64f   :  { %1208 = vmatpush3.bf16.msra.mxu1 %v1272_v9 }
 0x650   :  { %1209 = vmatprep.subr.bf16.mxu1 %v1342_v15 }
 0x653   :  { %1210 = vmatpush3.bf16.msra.mxu1 %v1273_v10 }
 0x654   :  { %1211 = vmatprep.subr.bf16.mxu1 %v1342_v15 }
 0x657   :  { %1212 = vmatpush3.bf16.msra.mxu1 %v1274_v11 }
 0x658   :  { %1213 = vmatprep.subr.bf16.mxu1 %v1342_v15 }
 0x65b   :  { %1214 = vmatpush3.bf16.msra.mxu1 %v1275_v12 }
 0x6fe   :  { %v788_v54 = vpop.f32.mrf.mxu1 }
 0x6ff   :  { %v789_v29 = vadd.f32 %v1074_v49, %v788_v54 }
 0x700   :  { %v1189_v50 = vpop.f32.mrf.mxu1 }
 0x701   :  { %v1581_v30 = vadd.f32 %v789_v29, %v1428_v0 }
 0x702   :  { %v791_v31 = vpop.f32.mrf.mxu1 }
 0x703   :  { %v792_v32 = vadd.f32 %v1074_v49, %v791_v31  ;;  %v799_v33 = vsel %vm50_vm0, %v1581_v30, 0.0 }
 0x704   :  { %800 = vadd.xlane.f32.xlu0 %v799_v33  ;;  %v1190_v34 = vpop.f32.mrf.mxu1 }
 0x705   :  { %v1586_v35 = vadd.f32 %v792_v32, %v1433_v1 }
 0x707   :  { %v802_v36 = vsel %vm50_vm0, %v1586_v35, 0.0 }
 0x708   :  { %803 = vadd.xlane.f32.xlu1 %v802_v36 }
 0x78d   :  { %v801_v37 = vpop.xlane.xlu0 %800 }
 0x78e   :  { %v805_v38 = vmul.f32 0.03125, %v801_v37 }
 0x790   :  { %v807_v39 = vsub.f32 %v1581_v30, %v805_v38  ;;  %v1084_v38 = vld [vmem:[%s1665_s12] ss:$0 sm:$0xff] }
 0x791   :  { %v804_v0 = vpop.xlane.xlu1 %803 }
 0x792   :  { %v806_v40 = vmul.f32 0.03125, %v804_v0  ;;  %v809_v41 = vmul.f32 %v807_v39, %v807_v39 }
 0x794   :  { %v808_v43 = vsub.f32 %v1586_v35, %v806_v40  ;;  %v811_v44 = vsel %vm50_vm0, %v809_v41, 0.0 }
 0x795   :  { %812 = vadd.xlane.f32.xlu0 %v811_v44 }
 0x796   :  { %v810_v45 = vmul.f32 %v808_v43, %v808_v43 }
 0x798   :  { %v814_v1 = vsel %vm50_vm0, %v810_v45, 0.0 }
 0x799   :  { %815 = vadd.xlane.f32.xlu0 %v814_v1 }
 0x81e   :  { %v813_v48 = vpop.xlane.xlu0 %812 }
 0x81f   :  { %v817_v51 = vmul.f32 0.03125, %v813_v48 }
 0x821   :  { %v819_v52 = vadd.f32 1e-05, %v817_v51 }
 0x822   :  { %v816_v53 = vpop.xlane.xlu0 %815 }
 0x823   :  { %1312 = vrsqrt.f32 %v819_v52  ;;  %v818_v55 = vmul.f32 0.03125, %v816_v53 }
 0x825   :  { %v820_v42 = vadd.f32 1e-05, %v818_v55 }
 0x827   :  { %1314 = vrsqrt.f32 %v820_v42 }
 0x830   :  { %v1313_v56 = vpop.eup %1312 }
 0x831   :  { %v823_v57 = vmul.f32 %v1313_v56, %v807_v39 }
 0x833   :  { %v831_v61 = vmul.f32 %v1078_v58, %v823_v57 }
 0x834   :  { %v1315_v59 = vpop.eup %1314 }
 0x835   :  { %v824_v60 = vmul.f32 %v1315_v59, %v808_v43  ;;  %v839_v2 = vadd.f32 %v1079_v62, %v831_v61 }
 0x837   :  { %v832_v63 = vmul.f32 %v1078_v58, %v824_v60 }
 0x839   :  { %v840_v3 = vadd.f32 %v1079_v62, %v832_v63 }
 0x83b   :  { %v841_v4 = vpack.c.bf16 %v840_v3, %v839_v2 }
 0x83d   :  { %1196 = vmatmul.mubr.msk.bf16.vlgmr.msra.gmra.mxu0 %vm50_vm0, %v841_v4 }
 0x8fd   :  { %v902_v14 = vpop.f32.mrf.mxu0 }
 0x8fe   :  { %v903_v16 = vadd.f32 %v1080_v13, %v902_v14 }
 0x8ff   :  { %v1197_v17 = vpop.f32.mrf.mxu0 }
 0x900   :  { %v911_v18 = vmul.f32 %v903_v16, %v903_v16  ;;  %v909_v31 = vmul.f32 0.5, %v903_v16 }
 0x901   :  { %v905_v19 = vpop.f32.mrf.mxu0 }
 0x902   :  { %v913_v20 = vmul.f32 %v911_v18, %v903_v16  ;;  %v906_v21 = vadd.f32 %v1080_v13, %v905_v19 }
 0x903   :  { %v1198_v22 = vpop.f32.mrf.mxu0 }
 0x904   :  { %v915_v23 = vmul.f32 0.044715, %v913_v20  ;;  %v912_v24 = vmul.f32 %v906_v21, %v906_v21  ;;  %v910_v32 = vmul.f32 0.5, %v906_v21 }
 0x906   :  { %v917_v25 = vadd.f32 %v915_v23, %v903_v16  ;;  %v914_v26 = vmul.f32 %v912_v24, %v906_v21 }
 0x908   :  { %v919_v27 = vmul.f32 0.7978846, %v917_v25  ;;  %v916_v28 = vmul.f32 0.044715, %v914_v26 }
 0x90a   :  { %1316 = vtanh.f32 %v919_v27  ;;  %v918_v15 = vadd.f32 %v916_v28, %v906_v21 }
 0x90c   :  { %v920_v49 = vmul.f32 0.7978846, %v918_v15 }
 0x90e   :  { %1318 = vtanh.f32 %v920_v49 }
 0x917   :  { %v1317_v54 = vpop.eup %1316 }
 0x918   :  { %v923_v29 = vadd.f32 1.0, %v1317_v54 }
 0x91a   :  { %v925_v34 = vmul.f32 %v923_v29, %v909_v31 }
 0x91b   :  { %v1319_v50 = vpop.eup %1318 }
 0x91c   :  { %v924_v33 = vadd.f32 1.0, %v1319_v50 }
 0x91e   :  { %v926_v36 = vmul.f32 %v924_v33, %v910_v32 }
 0x920   :  { %v927_v37 = vpack.c.bf16 %v926_v36, %v925_v34 }
 0x922   :  { %1216 = vmatmul.mubr.bf16.vlgmr.msra.gmra.mxu1 %v927_v37 }
 0x9e2   :  { %v1033_v39 = vpop.f32.mrf.mxu1 }
 0x9e3   :  { %v1034_v0 = vadd.f32 %v1084_v38, %v1033_v39 }
 0x9e4   :  { %v1217_v40 = vpop.f32.mrf.mxu1 }
 0x9e5   :  { %v1040_v41 = vadd.f32 %v1034_v0, %v1581_v30 }
 0x9e6   :  { %v1036_v43 = vpop.f32.mrf.mxu1 }
 0x9e7   :  { %1042 = vst.msk [vmem:[#allocation2] sm:$0xff] %vm50_vm0, %v1040_v41  ;;  %v1037_v44 = vadd.f32 %v1084_v38, %v1036_v43 }
 0x9e8   :  { %v1218_v45 = vpop.f32.mrf.mxu1 }
 0x9e9   :  { %v1041_v1 = vadd.f32 %v1037_v44, %v1586_v35 }
 0x9eb   :  { %1043 = vst.msk [vmem:[#allocation2 + $0x8] sm:$0xff] %vm50_vm0, %v1041_v1 }
 0x9ec   :  { %1331 = shalt.err (!%p1328_p4)
}
 0x9ed   :  { %s1354_s12 = smov 128  }
 0x9ee   :  { %1055 = dma.vmem_to_hbm [thread:$0]  %s1050_s29, 256, %s1666_s13, [#allocation3], %s1354_s12, %s1354_s12, %s1350_s26  }
 0x9ef   :  { %1340 = dma.done.wait [#allocation3], 256  }
 0x9f0   :  { %1341 = vsyncadd [#allocation3], 4294967040 }
 0x9f1   :  { %1059 = vsyncpa [#allocation3], 1 }

</bundles_post_ra>
